<compile_context>
chip_gen: v6e
topology: v6e:2x2x1
jax: 0.10.0
libtpu: 0.0.40
codegen_flags: <defaults>
</compile_context>

<pallas_src>
import jax
import jax.numpy as jnp
from jax.experimental import pallas as pl
from jax.experimental.pallas import tpu as pltpu

NUM_CLASSES = 10          # config.NUM_CLASSES
INIT_RANGE = 0.02         # typical deberta initializer_range


def pool_fc_kernel(h_ref, m_ref, w_ref, b_ref, o_ref):
    """TB batch rows per grid step.

    h_ref: (TB, S, H) native dtype -- last_hidden_state tile (dominant stream)
    m_ref: (TB, 1, S) float32     -- attention mask tile (pre-shaped, no relayout)
    w_ref: (H, C)     float32     -- fc weight (transposed, VMEM-resident)
    b_ref: (1, C)     float32     -- fc bias (VMEM-resident)
    o_ref: (TB, C)    float32     -- output logits tile
    """
    h = h_ref[...]                                     # (TB, S, H)
    m = m_ref[...]                                     # (TB, 1, S) f32

    # MeanPooling: sum(h * mask, axis=seq) / clamp(sum(mask, axis=seq), 1e-9).
    # Masked sum over S as a batched MXU contraction with f32 accumulation.
    # (cast is a no-op for f32 streams; exact for 0/1 masks in bf16)
    mw = m.astype(h.dtype)                             # (TB, 1, S)
    sum_emb = jnp.einsum(
        'bks,bsh->bkh', mw, h,
        preferred_element_type=jnp.float32)[:, 0, :]   # (TB, H) f32

    sum_mask = jnp.sum(m[:, 0, :], axis=1, keepdims=True)   # (TB, 1) f32
    sum_mask = jnp.maximum(sum_mask, 1e-9)                  # torch.clamp(min=1e-9)
    mean_emb = sum_emb / sum_mask                           # (TB, H)

    # fc: mean_emb @ W + b  (MXU matmul, f32 accumulation)
    logits = jnp.dot(mean_emb, w_ref[...],
                     preferred_element_type=jnp.float32) + b_ref[...]
    o_ref[...] = logits.astype(o_ref.dtype)            # (TB, C)


def _pick_tb(b_pad, seq, hidden, elem_bytes, h_budget_bytes):
    """Largest batch tile (multiple of 8, divisor of b_pad) whose
    double-buffered hidden block fits the per-generation VMEM budget.
    Never falls back to the full batch; the floor is TB=8. Keeps >=2 grid
    steps when possible so both v7x TensorCores are used."""
    per_row = 2 * elem_bytes * seq * hidden            # double-buffered bytes/row
    cap = h_budget_bytes // max(per_row, 1)
    best = 8                                           # smallest valid tile
    for tb in range(8, b_pad + 1, 8):
        if b_pad % tb:
            continue
        if tb > cap:
            continue
        if tb > 8 and b_pad // tb < 2:                 # keep >=2 parallel steps
            continue
        best = max(best, tb)
    return best


def custom_model_head(last_hidden_state, attention_mask, fc_weight, fc_bias):
    """last_hidden_state: [B, S, H]; attention_mask: [B, S] (any numeric).

    fc_weight: [C, H] (PyTorch Linear layout), fc_bias: [C].
    Returns logits [B, C] (float32).
    """
    B, S, H = last_hidden_state.shape
    C = fc_bias.shape[0]

    # Keep the dominant input in its native dtype (no unfused wrapper cast).
    h = last_hidden_state
    elem_bytes = jnp.dtype(h.dtype).itemsize

    # Pad batch to a multiple of 8 (sublane constraint on the (TB, C) output
    # tile). Padded rows have an all-zero mask -> mean 0 -> logits = bias,
    # and are sliced off below.
    b_pad = max(8, ((B + 7) // 8) * 8)
    if b_pad != B:
        h = jnp.pad(h, ((0, b_pad - B), (0, 0), (0, 0)))
        attention_mask = jnp.pad(attention_mask, ((0, b_pad - B), (0, 0)))

    mask3 = attention_mask.astype(jnp.float32).reshape(b_pad, 1, S)

    # TODO(synk): in production pre-transpose the weight once, not per call.
    w_t = fc_weight.T.astype(jnp.float32)              # [H, C]
    b2 = fc_bias.astype(jnp.float32).reshape(1, C)     # [1, C]

    # Generation-aware VMEM budgeting.
    try:
        vmem_cap = int(pltpu.get_tpu_info().vmem_capacity_bytes)
    except Exception:
        vmem_cap = 64 * 1024 * 1024                    # conservative (v7x-sized)
    if vmem_cap >= 96 * 1024 * 1024:                   # v5e / v6e: 128 MiB physical
        h_budget = 48 * 1024 * 1024
    else:                                              # v7x: 64 MiB per TensorCore
        h_budget = 36 * 1024 * 1024

    TB = _pick_tb(b_pad, S, H, elem_bytes, h_budget)

    # Explicit scoped-VMEM limit: h double-buffer + mask/weight/bias/output +
    # internal scratch headroom, kept below physical capacity.
    vmem_limit = int(min(h_budget + (16 << 20), int(vmem_cap * 0.85)))

    out = pl.pallas_call(
        pool_fc_kernel,
        out_shape=jax.ShapeDtypeStruct((b_pad, C), jnp.float32),
        grid_spec=pltpu.PrefetchScalarGridSpec(
            num_scalar_prefetch=0,
            grid=(b_pad // TB,),
            in_specs=[
                pl.BlockSpec((TB, S, H), lambda i: (i, 0, 0)),  # hidden states
                pl.BlockSpec((TB, 1, S), lambda i: (i, 0, 0)),  # mask (pre-shaped)
                pl.BlockSpec((H, C), lambda i: (0, 0)),         # weight (resident)
                pl.BlockSpec((1, C), lambda i: (0, 0)),         # bias (resident)
            ],
            out_specs=pl.BlockSpec((TB, C), lambda i: (i, 0)),
        ),
        compiler_params=pltpu.CompilerParams(
            dimension_semantics=("parallel",),
            vmem_limit_bytes=vmem_limit),
    )(h, mask3, w_t, b2)

    return out[:B]


def reference_head(last_hidden_state, attention_mask, fc_weight, fc_bias):
    m = attention_mask.astype(jnp.float32)[..., None]
    sum_emb = jnp.sum(last_hidden_state.astype(jnp.float32) * m, axis=1)
    sum_mask = jnp.maximum(jnp.sum(m, axis=1), 1e-9)
    mean_emb = sum_emb / sum_mask
    return mean_emb @ fc_weight.T.astype(jnp.float32) + fc_bias.astype(jnp.float32)


if __name__ == "__main__":
    # Small, module-consistent shapes: batch=2, seq=8, hidden=32, classes=10
    B, S, H, C = 2, 8, 32, NUM_CLASSES

    key = jax.random.PRNGKey(0)
    k_h, k_w = jax.random.split(key, 2)

    # Synthetic backbone output (stands in for AutoModel's last_hidden_state)
    last_hidden_state = jax.random.normal(k_h, (B, S, H), dtype=jnp.float32)

    # Attention mask: first example fully attended, second has padding
    attention_mask = jnp.array(
        [[1, 1, 1, 1, 1, 1, 1, 1],
         [1, 1, 1, 1, 1, 0, 0, 0]], dtype=jnp.int32)

    # Deterministic parameter init matching _init_weights for nn.Linear:
    #   weight ~ Normal(0, initializer_range), bias = 0
    fc_weight = INIT_RANGE * jax.random.normal(k_w, (C, H), dtype=jnp.float32)
    fc_bias = jnp.zeros((C,), dtype=jnp.float32)

    out = custom_model_head(last_hidden_state, attention_mask, fc_weight, fc_bias)
    out = jax.block_until_ready(out)

    # The kernel now streams f32 end-to-end, so compare against the exact
    # f32 reference (only reduction-order differences remain).
    ref = reference_head(last_hidden_state, attention_mask, fc_weight, fc_bias)

    assert out.shape == (B, C)
    assert jnp.allclose(out, ref, atol=1e-4, rtol=1e-4), "mismatch vs reference"

    print("KERNEL_OK")
</pallas_src>

<mosaic_0001>
module attributes {stable_mosaic.version = 11 : i64} {
  func.func @pool_fc_kernel(%arg0: i32, %arg1: memref<8x8x32xf32, #tpu.memory_space<vmem>>, %arg2: memref<8x1x8xf32, #tpu.memory_space<vmem>>, %arg3: memref<32x10xf32, #tpu.memory_space<vmem>>, %arg4: memref<1x10xf32, #tpu.memory_space<vmem>>, %arg5: memref<8x10xf32, #tpu.memory_space<vmem>>) attributes {dimension_semantics = [#tpu.dimension_semantics<parallel>], iteration_bounds = array<i64: 1>, scalar_prefetch = 0 : i64, scratch_operands = 0 : i64, tpu.core_type = #tpu.core_type<tc>, window_params = [{transform_indices = @transform_0, window_bounds = array<i64: 8, 8, 32>}, {transform_indices = @transform_1, window_bounds = array<i64: 8, 1, 8>}, {pipeline_mode = #tpu.pipeline_mode<synchronous>, transform_indices = @transform_2, window_bounds = array<i64: 32, 10>}, {pipeline_mode = #tpu.pipeline_mode<synchronous>, transform_indices = @transform_3, window_bounds = array<i64: 1, 10>}, {transform_indices = @transform_4, window_bounds = array<i64: 8, 10>}]} {
    %c0 = arith.constant 0 : index
    %c0_0 = arith.constant 0 : index
    %c0_1 = arith.constant 0 : index
    %0 = vector.load %arg1[%c0, %c0_0, %c0_1] : memref<8x8x32xf32, #tpu.memory_space<vmem>>, vector<8x8x32xf32>
    %c0_2 = arith.constant 0 : index
    %c0_3 = arith.constant 0 : index
    %c0_4 = arith.constant 0 : index
    %1 = vector.load %arg2[%c0_2, %c0_3, %c0_4] : memref<8x1x8xf32, #tpu.memory_space<vmem>>, vector<8x1x8xf32>
    "tpu.trace_start"() <{level = 10 : i32, message = "bks,bsh->bkh"}> : () -> ()
    %cst = arith.constant dense<0.000000e+00> : vector<8x1x32xf32>
    %2 = tpu.matmul %1, %0, %cst {dimension_numbers = #tpu.dot_dimension_numbers<[2], [1], [1], [2], [0, 0, 0, 1, 1, 2], [0], [0]>} : vector<8x1x8xf32>, vector<8x8x32xf32>, vector<8x1x32xf32> -> vector<8x1x32xf32>
    "tpu.trace_stop"() : () -> ()
    %3 = vector.shape_cast %2 : vector<8x1x32xf32> to vector<8x32xf32>
    %4 = vector.shape_cast %1 : vector<8x1x8xf32> to vector<8x8xf32>
    %cst_5 = arith.constant dense<0.000000e+00> : vector<8xf32>
    %5 = vector.multi_reduction <add>, %4, %cst_5 [1] : vector<8x8xf32> to vector<8xf32>
    %6 = vector.shape_cast %5 : vector<8xf32> to vector<8x1xf32>
    %cst_6 = arith.constant 9.99999971E-10 : f32
    %7 = vector.broadcast %cst_6 : f32 to vector<8x1xf32>
    %8 = arith.maximumf %6, %7 : vector<8x1xf32>
    %9 = vector.broadcast %8 : vector<8x1xf32> to vector<8x32xf32>
    %10 = arith.divf %3, %9 : vector<8x32xf32>
    %c0_7 = arith.constant 0 : index
    %c0_8 = arith.constant 0 : index
    %11 = vector.load %arg3[%c0_7, %c0_8] : memref<32x10xf32, #tpu.memory_space<vmem>>, vector<32x10xf32>
    %cst_9 = arith.constant dense<0.000000e+00> : vector<8x10xf32>
    %12 = tpu.matmul %10, %11, %cst_9 {dimension_numbers = #tpu.dot_dimension_numbers<[1], [0], [0], [1], [0, 0, 1, 1], [], []>} : vector<8x32xf32>, vector<32x10xf32>, vector<8x10xf32> -> vector<8x10xf32>
    %c0_10 = arith.constant 0 : index
    %c0_11 = arith.constant 0 : index
    %13 = vector.load %arg4[%c0_10, %c0_11] : memref<1x10xf32, #tpu.memory_space<vmem>>, vector<1x10xf32>
    %14 = vector.broadcast %13 : vector<1x10xf32> to vector<8x10xf32>
    %15 = arith.addf %12, %14 : vector<8x10xf32>
    %c0_12 = arith.constant 0 : index
    %c0_13 = arith.constant 0 : index
    %16 = vector.load %arg5[%c0_12, %c0_13] : memref<8x10xf32, #tpu.memory_space<vmem>>, vector<8x10xf32>
    tpu.vector_store %arg5[%c0_12, %c0_13], %15 {strides = array<i32>} : memref<8x10xf32, #tpu.memory_space<vmem>>, vector<8x10xf32>,
    return
  }
  func.func @transform_0(%arg0: i32) -> (i32, i32, i32) {
    %c0_i32 = arith.constant 0 : i32
    %c0_i32_0 = arith.constant 0 : i32
    %c0_i32_1 = arith.constant 0 : i32
    return %arg0, %c0_i32, %c0_i32_0 : i32, i32, i32
  }
  func.func @transform_1(%arg0: i32) -> (i32, i32, i32) {
    %c0_i32 = arith.constant 0 : i32
    %c0_i32_0 = arith.constant 0 : i32
    %c0_i32_1 = arith.constant 0 : i32
    return %arg0, %c0_i32, %c0_i32_0 : i32, i32, i32
  }
  func.func @transform_2(%arg0: i32) -> (i32, i32) {
    %c0_i32 = arith.constant 0 : i32
    %c0_i32_0 = arith.constant 0 : i32
    %c0_i32_1 = arith.constant 0 : i32
    return %c0_i32, %c0_i32_0 : i32, i32
  }
  func.func @transform_3(%arg0: i32) -> (i32, i32) {
    %c0_i32 = arith.constant 0 : i32
    %c0_i32_0 = arith.constant 0 : i32
    %c0_i32_1 = arith.constant 0 : i32
    return %c0_i32, %c0_i32_0 : i32, i32
  }
  func.func @transform_4(%arg0: i32) -> (i32, i32) {
    %c0_i32 = arith.constant 0 : i32
    %c0_i32_0 = arith.constant 0 : i32
    return %arg0, %c0_i32 : i32, i32
  }
}

</mosaic_0001>

<bundles_post_ra>
// kernel: tpu_custom_call.1
= control target key start
LH: loop header
LB: loop body
LE: loop exit
PB: predicated region body
PF: predicated region fallthrough
CT: control target
= control target key end

     0   :  { %9 = vsyncpa [#allocation3], 0  ;;  %s1114_s0 = inlined_call_operand.hbm [shape: f32[8,8,32], index: 0, kind: input, shape index: {}]   ;;  %s1115_s1 = inlined_call_operand.vmem [shape: f32[8,1,8], index: 1, kind: input, shape index: {}]   ;;  %s1116_s2 = inlined_call_operand.vmem [shape: f32[32,10], index: 2, kind: input, shape index: {}]   ;;  %s1117_s3 = inlined_call_operand.vmem [shape: f32[1,10], index: 3, kind: input, shape index: {}]   ;;  %s1118_s4 = inlined_call_operand.hbm [shape: f32[8,10], index: 4, kind: output, shape index: {}]  }
   0x1   :  { %10 = vsyncpa [#allocation4], 0  ;;  %s998_s15 = smov [#allocation2]  }
   0x2   :  { %s16_s16 = sshll.u32 %s998_s15, 4  ;;  %s17_s16 = int_to_ptr.vmem [resolvable:$true] %s16_s16 }
   0x3   :  { %s962_s17 = scalar_lea.vmem %s17_s16, 1024  ;;  %p967_p1 = scmp.lt.s32.totalorder %s17_s16, %s17_s16 }
   0x4   :  { %p963_p0 = scmp.ne.s32.totalorder %s17_s16, %s962_s17  ;;  %p968_p2 = scmp.lt.s32.totalorder %s962_s17, %s962_s17 }
   0x6   :  { %p969_p3 = por %p968_p2, %p967_p1 }
   0x8   :  { %p970_p4 = pnand %p969_p3, %p963_p0 }
   0xa   :  { %973 = shalt.err (!%p970_p4)
}
   0xb   :  { %s999_s18 = smov 128   ;;  %s1000_s19 = smov 8  }
   0xc   :  { %22 = dma.hbm_to_vmem [thread:$0]  %s1114_s0, 1024, %s17_s16, [#allocation3], %s999_s18, %s999_s18, %s1000_s19  }
   0xd   :  { %994 = dma.done.wait [#allocation3], 1024  }
   0xe   :  { %995 = vsyncadd [#allocation3], 4294966272  ;;  %v640_v0 = vlaneseq  ;;  %v1001_v1 = vmov 0.0   ;;  %vm1002_vm0 = vmmov 0   ;;  %v1003_v2 = vmov 1966171168  }
   0xf   :  { %880 = vmatprep.subr.mxu1 %v1001_v1  ;;  %882 = vmatprep.mubr.msk.f32.mxu1 %vm1002_vm0, %v1001_v1  ;;  %v638_v3 = vunpack.c.l.s4 %v1003_v2  ;;  %vm48_vm1 = vcmask 64512   ;;  %v32_v7 = vld [vmem:[#allocation2] sm:$0xff]  ;;  %v33_v11 = vld [vmem:[#allocation2 + $0x8] sm:$0xff]  ;;  %v34_v12 = vld [vmem:[#allocation2 + $0x10] sm:$0xff]  ;;  %vm739_vm2 = vcmask 1041409   ;;  %vm742_vm3 = vcmask 1042434  }
  0x10   :  { %v641_v4 = vshrl.u32 %v640_v0, 7  ;;  %890 = vmatprep.subr.mxu0 %v1001_v1  ;;  %892 = vmatprep.mubr.msk.f32.mxu0 %vm1002_vm0, %v1001_v1  ;;  %v40_v8 = vld [vmem:[%s1115_s1] sm:$0x1]  ;;  %v41_v9 = vld [vmem:[%s1115_s1 + $0x1] sm:$0x1]  ;;  %v35_v18 = vld [vmem:[#allocation2 + $0x18] sm:$0xff] }
  0x11   :  { %v639_v5 = vunpack.c.0.s8 %v638_v3  ;;  %881 = vmatpush3.msra.mxu1 %v32_v7  ;;  %v633_v10 = vcombine.low %v40_v8, %v41_v9  ;;  %v42_v13 = vld [vmem:[%s1115_s1 + $0x2] sm:$0x1]  ;;  %v43_v14 = vld [vmem:[%s1115_s1 + $0x3] sm:$0x1]  ;;  %891 = vmatpush3.msra.mxu0 %v34_v12  ;;  %v44_v19 = vld [vmem:[%s1115_s1 + $0x4] sm:$0x1] }
  0x12   :  { %883 = vmatmul.mubr.msk.f32.vlgmr.msra.gmra.mxu1 %vm48_vm1, %v40_v8  ;;  %885 = vmatprep.subr.mxu1 %v1001_v1  ;;  %v634_v16 = vcombine.low %v42_v13, %v43_v14  ;;  %v36_v17 = vld [vmem:[#allocation2 + $0x20] sm:$0xff]  ;;  %v38_v26 = vld [vmem:[#allocation2 + $0x30] sm:$0xff]  ;;  %v37_v29 = vld [vmem:[#allocation2 + $0x28] sm:$0xff]  ;;  %vm745_vm4 = vcmask 1043459   ;;  %vm748_vm5 = vcmask 1044484   ;;  %vm751_vm6 = vcmask 1045509  }
  0x13   :  { %v642_v6 = vsub.s32 %v639_v5, %v641_v4  ;;  %886 = vmatpush3.msra.mxu1 %v33_v11  ;;  %887 = vmatprep.mubr.msk.f32.mxu1 %vm1002_vm0, %v1001_v1  ;;  %v45_v20 = vld [vmem:[%s1115_s1 + $0x5] sm:$0x1]  ;;  %v46_v22 = vld [vmem:[%s1115_s1 + $0x6] sm:$0x1]  ;;  %v47_v24 = vld [vmem:[%s1115_s1 + $0x7] sm:$0x1] }
  0x14   :  { %893 = vmatmul.mubr.msk.f32.vlgmr.msra.gmra.mxu0 %vm48_vm1, %v42_v13  ;;  %895 = vmatprep.subr.mxu1 %v1001_v1  ;;  %v635_v23 = vcombine.low %v44_v19, %v45_v20  ;;  %v636_v25 = vcombine.low %v46_v22, %v47_v24  ;;  %v39_v33 = vld [vmem:[#allocation2 + $0x38] sm:$0xff]  ;;  %v721_v38 = vld [vmem:[%s1116_s2 + $0x10] sm:$0xff]  ;;  %v720_v39 = vld [vmem:[%s1116_s2 + $0x8] sm:$0xff]  ;;  %vm754_vm7 = vcmask 1046534   ;;  %vm757_vm8 = vcmask 1047559   ;;  %s1004_s19 = smov [#allocation5]  }
  0x15   :  { %v643_v15 = vrot.slane %v633_v10, %v642_v6  ;;  %v650_v21 = vrot.slane %v634_v16, %v642_v6  ;;  %900 = vmatprep.subr.mxu0 %v1001_v1  ;;  %902 = vmatprep.mubr.msk.f32.mxu0 %vm1002_vm0, %v1001_v1  ;;  %v722_v37 = vld [vmem:[%s1116_s2 + $0x18] sm:$0xff]  ;;  %v719_v40 = vld [vmem:[%s1116_s2] sm:$0xff]  ;;  %vm759_vm9 = vcmask 261120   ;;  %s840_s20 = sshll.u32 %s1004_s19, 4  ;;  %vm832_vm10 = vcmask 80896   ;;  %s841_s20 = int_to_ptr.vmem [resolvable:$true] %s840_s20 }
  0x16   :  { %888 = vmatmul.mubr.msk.f32.vlgmr.msra.gmra.mxu1 %vm48_vm1, %v41_v9  ;;  %901 = vmatpush3.msra.mxu0 %v36_v17  ;;  %v657_v27 = vrot.slane %v635_v23, %v642_v6  ;;  %v664_v30 = vrot.slane %v636_v25, %v642_v6  ;;  %s974_s21 = scalar_lea.vmem %s841_s20, 128  ;;  %p979_p6 = scmp.lt.s32.totalorder %s841_s20, %s841_s20 }
  0x17   :  { %896 = vmatpush3.msra.mxu1 %v35_v18  ;;  %v665_v28 = vcombine.low %v643_v15, %v650_v21  ;;  %897 = vmatprep.mubr.msk.f32.mxu1 %vm1002_vm0, %v1001_v1  ;;  %p975_p5 = scmp.ne.s32.totalorder %s841_s20, %s974_s21  ;;  %p980_p7 = scmp.lt.s32.totalorder %s974_s21, %s974_s21 }
  0x18   :  { %903 = vmatmul.mubr.msk.f32.vlgmr.msra.gmra.mxu0 %vm48_vm1, %v44_v19  ;;  %905 = vmatprep.subr.mxu1 %v1001_v1  ;;  %v666_v31 = vcombine.low %v657_v27, %v664_v30 }
  0x19   :  { %910 = vmatprep.subr.mxu0 %v1001_v1  ;;  %v673_v32 = vrot.slane %v665_v28, %v642_v6  ;;  %912 = vmatprep.mubr.msk.f32.mxu0 %vm1002_vm0, %v1001_v1  ;;  %p981_p8 = por %p980_p7, %p979_p6 }
  0x1a   :  { %898 = vmatmul.mubr.msk.f32.vlgmr.msra.gmra.mxu1 %vm48_vm1, %v43_v14  ;;  %911 = vmatpush3.msra.mxu0 %v38_v26  ;;  %v680_v34 = vrot.slane %v666_v31, %v642_v6 }
  0x1b   :  { %906 = vmatpush3.msra.mxu1 %v37_v29  ;;  %907 = vmatprep.mubr.msk.f32.mxu1 %vm1002_vm0, %v1001_v1  ;;  %p982_p9 = pnand %p981_p8, %p975_p5 }
  0x1c   :  { %913 = vmatmul.mubr.msk.f32.vlgmr.msra.gmra.mxu0 %vm48_vm1, %v46_v22  ;;  %915 = vmatprep.subr.mxu1 %v1001_v1  ;;  %v681_v35 = vcombine.low %v673_v32, %v680_v34  ;;  %v857_v32 = vld [vmem:[%s1117_s3] ss:$0 sm:$0xff] }
  0x1d   :  { %920 = vmatprep.subr.mxu0 %v1001_v1  ;;  %928 = vmatprep.mubr.msk.f32.mxu0 %vm1002_vm0, %v1001_v1 }
  0x1e   :  { %908 = vmatmul.mubr.msk.f32.vlgmr.msra.gmra.mxu1 %vm48_vm1, %v45_v20  ;;  %v683_v36 = vsel %vm48_vm1, %v681_v35, 0.0  ;;  %921 = vmatpush3.msra.mxu0 %v722_v37 }
  0x1f   :  { %916 = vmatpush3.msra.mxu1 %v39_v33  ;;  %917 = vmatprep.mubr.msk.f32.mxu1 %vm1002_vm0, %v1001_v1 }
  0x20   :  { %684 = vadd.xlane.f32.xlu0 %v683_v36  ;;  %922 = vmatprep.subr.mxu0 %v1001_v1 }
  0x21   :  { %923 = vmatpush3.msra.mxu0 %v721_v38 }
  0x22   :  { %918 = vmatmul.mubr.msk.f32.vlgmr.msra.gmra.mxu1 %vm48_vm1, %v47_v24  ;;  %924 = vmatprep.subr.mxu0 %v1001_v1 }
  0x23   :  { %925 = vmatpush3.msra.mxu0 %v720_v39 }
  0x24   :  { %926 = vmatprep.subr.mxu0 %v1001_v1 }
  0x25   :  { %927 = vmatpush3.msra.mxu0 %v719_v40 }
  0xa9   :  { %v685_v41 = vpop.xlane.xlu0 %684 }
  0xaa   :  { %v686_v42 = vmax.f32 %v685_v41, 1e-09 }
  0xac   :  { %v689_v43 = vrot.slane %v686_v42, 2  ;;  %v688_v44 = vrot.slane %v686_v42, 1  ;;  %v691_v45 = vrot.slane %v686_v42, 4  ;;  %v690_v46 = vrot.slane %v686_v42, 3 }
  0xad   :  { %v693_v47 = vrot.slane %v686_v42, 6  ;;  %v692_v48 = vrot.slane %v686_v42, 5  ;;  %v694_v49 = vrot.slane %v686_v42, 7 }
  0xae   :  { %938 = vrcp.f32 %v689_v43 }
  0xaf   :  { %940 = vrcp.f32 %v688_v44 }
  0xb0   :  { %942 = vrcp.f32 %v686_v42 }
  0xb1   :  { %944 = vrcp.f32 %v691_v45 }
  0xb2   :  { %946 = vrcp.f32 %v690_v46 }
  0xb3   :  { %948 = vrcp.f32 %v693_v47 }
  0xb4   :  { %950 = vrcp.f32 %v692_v48 }
  0xb5   :  { %952 = vrcp.f32 %v694_v49 }
  0xbb   :  { %v939_v51 = vpop.eup %938 }
  0xbc   :  { %v941_v52 = vpop.eup %940 }
  0xbd   :  { %v943_v55 = vpop.eup %942 }
  0xbe   :  { %v945_v59 = vpop.eup %944 }
  0xbf   :  { %v947_v61 = vpop.eup %946 }
  0xc0   :  { %v949_v10 = vpop.eup %948 }
  0xc1   :  { %v951_v12 = vpop.eup %950 }
  0xc2   :  { %v953_v22 = vpop.eup %952 }
  0xd2   :  { %v118_v50 = vpop.f32.mrf.mxu1 }
  0xd3   :  { %v704_v0 = vmul.f32 %v943_v55, %v118_v50 }
  0xd4   :  { %v884_v53 = vpop.f32.mrf.mxu1  ;;  %v264_v54 = vpop.f32.mrf.mxu0 }
  0xd5   :  { %v708_v56 = vmul.f32 %v939_v51, %v264_v54 }
  0xd6   :  { %v191_v57 = vpop.f32.mrf.mxu1  ;;  %v894_v58 = vpop.f32.mrf.mxu0 }
  0xd7   :  { %v706_v60 = vmul.f32 %v941_v52, %v191_v57  ;;  %v741_v2 = vrot.slane %v708_v56, 6 }
  0xd8   :  { %v889_v62 = vpop.f32.mrf.mxu1  ;;  %v410_v63 = vpop.f32.mrf.mxu0 }
  0xd9   :  { %v738_v1 = vrot.slane %v706_v60, 7  ;;  %v712_v3 = vmul.f32 %v945_v59, %v410_v63 }
  0xda   :  { %v337_v4 = vpop.f32.mrf.mxu1  ;;  %v904_v5 = vpop.f32.mrf.mxu0 }
  0xdb   :  { %v740_v6 = vsel %vm739_vm2, %v738_v1, %v704_v0  ;;  %v710_v7 = vmul.f32 %v947_v61, %v337_v4  ;;  %v747_v13 = vrot.slane %v712_v3, 4 }
  0xdc   :  { %v899_v8 = vpop.f32.mrf.mxu1  ;;  %v556_v9 = vpop.f32.mrf.mxu0  ;;  %v743_v14 = vsel %vm742_vm3, %v741_v2, %v740_v6 }
  0xdd   :  { %v744_v11 = vrot.slane %v710_v7, 5  ;;  %v716_v19 = vmul.f32 %v949_v10, %v556_v9 }
  0xde   :  { %v483_v15 = vpop.f32.mrf.mxu1  ;;  %v914_v16 = vpop.f32.mrf.mxu0 }
  0xdf   :  { %v746_v17 = vsel %vm745_vm4, %v744_v11, %v743_v14  ;;  %v714_v18 = vmul.f32 %v951_v12, %v483_v15  ;;  %v753_v27 = vrot.slane %v716_v19, 2 }
  0xe0   :  { %v909_v20 = vpop.f32.mrf.mxu1  ;;  %v749_v23 = vsel %vm748_vm5, %v747_v13, %v746_v17 }
  0xe1   :  { %v750_v21 = vrot.slane %v714_v18, 3 }
  0xe2   :  { %v629_v24 = vpop.f32.mrf.mxu1 }
  0xe3   :  { %v752_v25 = vsel %vm751_vm6, %v750_v21, %v749_v23  ;;  %v718_v26 = vmul.f32 %v953_v22, %v629_v24 }
  0xe4   :  { %v919_v28 = vpop.f32.mrf.mxu1  ;;  %v755_v30 = vsel %vm754_vm7, %v753_v27, %v752_v25 }
  0xe5   :  { %v756_v29 = vrot.slane %v718_v26, 1 }
  0xe7   :  { %v758_v31 = vsel %vm757_vm8, %v756_v29, %v755_v30 }
  0xe8   :  { %929 = vmatmul.mubr.msk.f32.vlgmr.msra.gmra.mxu0 %vm759_vm9, %v758_v31 }
 0x1a8   :  { %v828_v33 = vpop.f32.mrf.mxu0 }
 0x1a9   :  { %v829_v34 = vadd.f32 %v857_v32, %v828_v33 }
 0x1aa   :  { %v930_v35 = vpop.f32.mrf.mxu0 }
 0x1ab   :  { %833 = vst.msk [vmem:[#allocation5] sm:$0xff] %vm832_vm10, %v829_v34 }
 0x1ac   :  { %985 = shalt.err (!%p982_p9)
}
 0x1ad   :  { %843 = dma.vmem_to_hbm [thread:$0]  %s841_s20, 128, %s1118_s4, [#allocation4]  }
 0x1ae   :  { %996 = dma.done.wait [#allocation4], 128  }
 0x1af   :  { %997 = vsyncadd [#allocation4], 4294967168 }
 0x1b0   :  { %847 = vsyncpa [#allocation3], 1 }
 0x1b1   :  { %848 = vsyncpa [#allocation4], 1 }

</bundles_post_ra>
